<compile_context>
chip_gen: v7x
topology: tpu7x:2x2x1
jax: 0.10.0
libtpu: 0.0.40
codegen_flags: <defaults>
</compile_context>

<pallas_src>
import numpy as np

import jax
import jax.numpy as jnp
from jax import lax
from jax.experimental import pallas as pl
from jax.experimental.pallas import tpu as pltpu


def _round_up(a, b):
    return (a + b - 1) // b * b


def sep_conv_br(x_nchw, w_dw, w_pw, gamma, beta, *, eps=1e-5):
    """Forward pass of SepConvBR (ksize=3, stride=1, padding=1, dilation=1, bias=False).

    x_nchw : (N, Cin, H, W)    float32
    w_dw   : (Cin, 1, 3, 3)    depthwise conv weight (PyTorch layout, bias=False)
    w_pw   : (Cout, Cin, 1, 1) pointwise conv weight (bias=False)
    gamma, beta : (Cout,)      BatchNorm2d affine parameters
    returns: (N, Cout, H, W)   float32
    """
    N, Cin, H, W = x_nchw.shape
    Cout = w_pw.shape[0]
    assert w_dw.shape == (Cin, 1, 3, 3) and w_pw.shape == (Cout, Cin, 1, 1)
    # TODO(synk): only the module default config (ksize=3, stride=1, padding=1,
    # dilation=1, bias=False, bn=True, relu=True) is implemented here.

    wp2 = W + 2                      # padded row width
    P0 = (H + 2) * wp2               # flattened padded image length
    Pf = P0 + 2                      # +1 guard each side so every tap offset >= 0
    L = H * wp2                      # per-image useful output slab length
    max_off = 2 * wp2 + 2            # largest static tap offset into the padded slab
    Lout = _round_up(N * Pf, 128)    # lane-dense output width (whole batch, 128-mult)
    Lin = max_off + Lout             # padded input lane length (last slice ends at Lin)
    K = 9 * Cin                      # folded contraction depth
    count = N * H * W                # BN statistics population (interior pixels only)
    inv_count = 1.0 / count

    # ---- wrapper glue: channels-major, all images concatenated along lanes, bf16 ----
    xt = jnp.transpose(x_nchw.astype(jnp.float32), (1, 0, 2, 3))          # (Cin,N,H,W)
    xp = jnp.pad(xt, ((0, 0), (0, 0), (1, 1), (1, 1)))                    # (Cin,N,H+2,W+2)
    pf = jnp.pad(xp.reshape(Cin, N, P0), ((0, 0), (0, 0), (1, 1)))        # (Cin,N,Pf)
    pf = pf.reshape(Cin, N * Pf)
    pf = jnp.pad(pf, ((0, 0), (0, Lin - N * Pf))).astype(jnp.bfloat16)    # (Cin,Lin)

    # ---- fold depthwise into pointwise: Wfold[o, k*Cin+c] = wpw[o,c] * wdw[c,kh,kw] ----
    wdw9 = w_dw[:, 0, :, :].reshape(Cin, 9).astype(jnp.float32)           # (Cin, 9)
    wpw2 = w_pw[:, :, 0, 0].astype(jnp.float32)                           # (Cout, Cin)
    wfold = jnp.einsum("oc,ck->okc", wpw2, wdw9).reshape(Cout, K)
    wfold = wfold.astype(jnp.bfloat16)                                    # (Cout, 9*Cin)

    # ---- interior mask: 1.0 on real output pixels, 0.0 on pad cols / gaps / round-up ----
    g = np.arange(Lout)
    seg = g % Pf
    col = seg % wp2
    interior = (g < N * Pf) & (seg < L) & (col >= 1) & (col <= W)
    mask = jnp.asarray(interior.astype(np.float32).reshape(1, Lout))      # (1, Lout)

    gamma2 = gamma.astype(jnp.float32).reshape(Cout, 1)
    beta2 = beta.astype(jnp.float32).reshape(Cout, 1)

    # ------------------ fused kernel: sep-conv matmul + BN(batch stats) + ReLU ---------
    def kernel(pf_ref, w_ref, mask_ref, g_ref, b_ref, o_ref, xs_ref):
        # Build the stacked (9*Cin, Lout) RHS once for the whole batch: one static
        # lane-shifted slice per tap (9 total), instead of 9 per image per matmul.
        for kh in range(3):
            for kw in range(3):
                k = kh * 3 + kw
                off = kh * wp2 + kw                       # static, 0 .. 2*wp2+2
                xs_ref[k * Cin:(k + 1) * Cin, :] = pf_ref[:, off:off + Lout]

        # Single K = 9*Cin MXU matmul, bf16 operands, f32 accumulation.
        acc = jnp.dot(w_ref[...], xs_ref[...],
                      preferred_element_type=jnp.float32)  # (Cout, Lout)

        # Training-mode BatchNorm batch statistics over interior pixels only.
        masked = acc * mask_ref[...]                       # zero pad/gap/round-up lanes
        mean = jnp.sum(masked, axis=1, keepdims=True) * inv_count             # (Cout,1)
        var = jnp.sum(masked * acc, axis=1, keepdims=True) * inv_count - mean * mean
        var = jnp.maximum(var, 0.0)
        invstd = lax.rsqrt(var + eps)
        scale = g_ref[...] * invstd                                            # (Cout,1)
        shift = b_ref[...] - mean * scale

        # Fused BN affine + ReLU; single lane-dense (128-multiple) f32 store.
        o_ref[...] = jnp.maximum(acc * scale + shift, 0.0)

    o = pl.pallas_call(
        kernel,
        out_shape=jax.ShapeDtypeStruct((Cout, Lout), jnp.float32),
        grid_spec=pltpu.PrefetchScalarGridSpec(
            num_scalar_prefetch=0,
            grid=(1,),
            in_specs=[pl.BlockSpec((Cin, Lin), lambda i: (0, 0)),
                      pl.BlockSpec((Cout, K), lambda i: (0, 0)),
                      pl.BlockSpec((1, Lout), lambda i: (0, 0)),
                      pl.BlockSpec((Cout, 1), lambda i: (0, 0)),
                      pl.BlockSpec((Cout, 1), lambda i: (0, 0))],
            out_specs=pl.BlockSpec((Cout, Lout), lambda i: (0, 0)),
            scratch_shapes=[pltpu.VMEM((K, Lout), jnp.bfloat16)]),
        compiler_params=pltpu.CompilerParams(
            dimension_semantics=("arbitrary",),
            vmem_limit_bytes=32 * 1024 * 1024),
    )(pf, wfold, mask, gamma2, beta2)

    # TODO(synk): nn.BatchNorm2d's running_mean/running_var momentum update is a
    # training-time buffer side effect, not part of the returned forward value.

    # ---- crop: per-image segment -> (H, W+2) rows -> drop the two pad columns ----
    o = o[:, :N * Pf].reshape(Cout, N, Pf)[:, :, :L]
    o = o.reshape(Cout, N, H, wp2)[:, :, :, 1:W + 1]
    return jnp.transpose(o, (1, 0, 2, 3))                 # (N, Cout, H, W)


# --------------------------------- reference -------------------------------------- #

def reference(x, w_dw, w_pw, gamma, beta, *, eps=1e-5):
    Cin = x.shape[1]
    dw = lax.conv_general_dilated(
        x, w_dw, window_strides=(1, 1), padding=((1, 1), (1, 1)),
        dimension_numbers=("NCHW", "OIHW", "NCHW"),
        feature_group_count=Cin)
    pw = lax.conv_general_dilated(
        dw, w_pw, window_strides=(1, 1), padding=((0, 0), (0, 0)),
        dimension_numbers=("NCHW", "OIHW", "NCHW"))
    mean = pw.mean(axis=(0, 2, 3), keepdims=True)
    var = pw.var(axis=(0, 2, 3), keepdims=True)
    yn = (pw - mean) * lax.rsqrt(var + eps) * gamma.reshape(1, -1, 1, 1) \
        + beta.reshape(1, -1, 1, 1)
    return jnp.maximum(yn, 0.0)


# ----------------------------------- main ------------------------------------------ #

if __name__ == "__main__":
    key = jax.random.PRNGKey(0)
    kx, kdw, kpw, kg, kb = jax.random.split(key, 5)

    N, Cin, Cout, H, W = 2, 4, 8, 16, 16

    x = jax.random.normal(kx, (N, Cin, H, W), dtype=jnp.float32)
    w_dw = 0.3 * jax.random.normal(kdw, (Cin, 1, 3, 3), dtype=jnp.float32)     # depthwise
    w_pw = 0.3 * jax.random.normal(kpw, (Cout, Cin, 1, 1), dtype=jnp.float32)  # pointwise
    gamma = 1.0 + 0.1 * jax.random.normal(kg, (Cout,), dtype=jnp.float32)
    beta = 0.1 * jax.random.normal(kb, (Cout,), dtype=jnp.float32)

    out = jax.block_until_ready(jax.jit(sep_conv_br)(x, w_dw, w_pw, gamma, beta))
    ref = jax.block_until_ready(reference(x, w_dw, w_pw, gamma, beta))

    assert out.shape == (N, Cout, H, W), out.shape
    if not np.allclose(np.asarray(out), np.asarray(ref), rtol=2e-2, atol=2e-2):
        max_err = float(jnp.max(jnp.abs(out - ref)))
        raise AssertionError(f"mismatch vs reference, max abs err = {max_err}")

    print("KERNEL_OK")
</pallas_src>

<mosaic_0001>
module attributes {stable_mosaic.version = 11 : i64} {
  func.func @kernel(%arg0: i32, %arg1: memref<4x806xbf16, #tpu.memory_space<vmem>>, %arg2: memref<8x36xbf16, #tpu.memory_space<vmem>>, %arg3: memref<1x768xf32, #tpu.memory_space<vmem>>, %arg4: memref<8x1xf32, #tpu.memory_space<vmem>>, %arg5: memref<8x1xf32, #tpu.memory_space<vmem>>, %arg6: memref<8x768xf32, #tpu.memory_space<vmem>>, %arg7: memref<36x768xbf16, #tpu.memory_space<vmem>>) attributes {dimension_semantics = [#tpu.dimension_semantics<arbitrary>], iteration_bounds = array<i64: 1>, scalar_prefetch = 0 : i64, scratch_operands = 1 : i64, tpu.core_type = #tpu.core_type<tc>, window_params = [{pipeline_mode = #tpu.pipeline_mode<synchronous>, transform_indices = @transform_0, window_bounds = array<i64: 4, 806>}, {pipeline_mode = #tpu.pipeline_mode<synchronous>, transform_indices = @transform_1, window_bounds = array<i64: 8, 36>}, {pipeline_mode = #tpu.pipeline_mode<synchronous>, transform_indices = @transform_2, window_bounds = array<i64: 1, 768>}, {pipeline_mode = #tpu.pipeline_mode<synchronous>, transform_indices = @transform_3, window_bounds = array<i64: 8, 1>}, {pipeline_mode = #tpu.pipeline_mode<synchronous>, transform_indices = @transform_4, window_bounds = array<i64: 8, 1>}, {pipeline_mode = #tpu.pipeline_mode<synchronous>, transform_indices = @transform_5, window_bounds = array<i64: 8, 768>}]} {
    %c0 = arith.constant 0 : index
    %c0_0 = arith.constant 0 : index
    %0 = vector.load %arg1[%c0, %c0_0] : memref<4x806xbf16, #tpu.memory_space<vmem>>, vector<4x768xbf16>
    %c0_1 = arith.constant 0 : index
    %c0_2 = arith.constant 0 : index
    %1 = vector.load %arg7[%c0_1, %c0_2] : memref<36x768xbf16, #tpu.memory_space<vmem>>, vector<4x768xbf16>
    tpu.vector_store %arg7[%c0_1, %c0_2], %0 {strides = array<i32>} : memref<36x768xbf16, #tpu.memory_space<vmem>>, vector<4x768xbf16>,
    %c0_3 = arith.constant 0 : index
    %c1 = arith.constant 1 : index
    %2 = vector.load %arg1[%c0_3, %c1] : memref<4x806xbf16, #tpu.memory_space<vmem>>, vector<4x768xbf16>
    %c4 = arith.constant 4 : index
    %c0_4 = arith.constant 0 : index
    %3 = vector.load %arg7[%c4, %c0_4] : memref<36x768xbf16, #tpu.memory_space<vmem>>, vector<4x768xbf16>
    tpu.vector_store %arg7[%c4, %c0_4], %2 {strides = array<i32>} : memref<36x768xbf16, #tpu.memory_space<vmem>>, vector<4x768xbf16>,
    %c0_5 = arith.constant 0 : index
    %c2 = arith.constant 2 : index
    %4 = vector.load %arg1[%c0_5, %c2] : memref<4x806xbf16, #tpu.memory_space<vmem>>, vector<4x768xbf16>
    %c8 = arith.constant 8 : index
    %c0_6 = arith.constant 0 : index
    %5 = vector.load %arg7[%c8, %c0_6] : memref<36x768xbf16, #tpu.memory_space<vmem>>, vector<4x768xbf16>
    tpu.vector_store %arg7[%c8, %c0_6], %4 {strides = array<i32>} : memref<36x768xbf16, #tpu.memory_space<vmem>>, vector<4x768xbf16>,
    %c0_7 = arith.constant 0 : index
    %c18 = arith.constant 18 : index
    %6 = vector.load %arg1[%c0_7, %c18] : memref<4x806xbf16, #tpu.memory_space<vmem>>, vector<4x768xbf16>
    %c12 = arith.constant 12 : index
    %c0_8 = arith.constant 0 : index
    %7 = vector.load %arg7[%c12, %c0_8] : memref<36x768xbf16, #tpu.memory_space<vmem>>, vector<4x768xbf16>
    tpu.vector_store %arg7[%c12, %c0_8], %6 {strides = array<i32>} : memref<36x768xbf16, #tpu.memory_space<vmem>>, vector<4x768xbf16>,
    %c0_9 = arith.constant 0 : index
    %c19 = arith.constant 19 : index
    %8 = vector.load %arg1[%c0_9, %c19] : memref<4x806xbf16, #tpu.memory_space<vmem>>, vector<4x768xbf16>
    %c16 = arith.constant 16 : index
    %c0_10 = arith.constant 0 : index
    %9 = vector.load %arg7[%c16, %c0_10] : memref<36x768xbf16, #tpu.memory_space<vmem>>, vector<4x768xbf16>
    tpu.vector_store %arg7[%c16, %c0_10], %8 {strides = array<i32>} : memref<36x768xbf16, #tpu.memory_space<vmem>>, vector<4x768xbf16>,
    %c0_11 = arith.constant 0 : index
    %c20 = arith.constant 20 : index
    %10 = vector.load %arg1[%c0_11, %c20] : memref<4x806xbf16, #tpu.memory_space<vmem>>, vector<4x768xbf16>
    %c20_12 = arith.constant 20 : index
    %c0_13 = arith.constant 0 : index
    %11 = vector.load %arg7[%c20_12, %c0_13] : memref<36x768xbf16, #tpu.memory_space<vmem>>, vector<4x768xbf16>
    tpu.vector_store %arg7[%c20_12, %c0_13], %10 {strides = array<i32>} : memref<36x768xbf16, #tpu.memory_space<vmem>>, vector<4x768xbf16>,
    %c0_14 = arith.constant 0 : index
    %c36 = arith.constant 36 : index
    %12 = vector.load %arg1[%c0_14, %c36] : memref<4x806xbf16, #tpu.memory_space<vmem>>, vector<4x768xbf16>
    %c24 = arith.constant 24 : index
    %c0_15 = arith.constant 0 : index
    %13 = vector.load %arg7[%c24, %c0_15] : memref<36x768xbf16, #tpu.memory_space<vmem>>, vector<4x768xbf16>
    tpu.vector_store %arg7[%c24, %c0_15], %12 {strides = array<i32>} : memref<36x768xbf16, #tpu.memory_space<vmem>>, vector<4x768xbf16>,
    %c0_16 = arith.constant 0 : index
    %c37 = arith.constant 37 : index
    %14 = vector.load %arg1[%c0_16, %c37] : memref<4x806xbf16, #tpu.memory_space<vmem>>, vector<4x768xbf16>
    %c28 = arith.constant 28 : index
    %c0_17 = arith.constant 0 : index
    %15 = vector.load %arg7[%c28, %c0_17] : memref<36x768xbf16, #tpu.memory_space<vmem>>, vector<4x768xbf16>
    tpu.vector_store %arg7[%c28, %c0_17], %14 {strides = array<i32>} : memref<36x768xbf16, #tpu.memory_space<vmem>>, vector<4x768xbf16>,
    %c0_18 = arith.constant 0 : index
    %c38 = arith.constant 38 : index
    %16 = vector.load %arg1[%c0_18, %c38] : memref<4x806xbf16, #tpu.memory_space<vmem>>, vector<4x768xbf16>
    %c32 = arith.constant 32 : index
    %c0_19 = arith.constant 0 : index
    %17 = vector.load %arg7[%c32, %c0_19] : memref<36x768xbf16, #tpu.memory_space<vmem>>, vector<4x768xbf16>
    tpu.vector_store %arg7[%c32, %c0_19], %16 {strides = array<i32>} : memref<36x768xbf16, #tpu.memory_space<vmem>>, vector<4x768xbf16>,
    %c0_20 = arith.constant 0 : index
    %c0_21 = arith.constant 0 : index
    %18 = vector.load %arg2[%c0_20, %c0_21] : memref<8x36xbf16, #tpu.memory_space<vmem>>, vector<8x36xbf16>
    %c0_22 = arith.constant 0 : index
    %c0_23 = arith.constant 0 : index
    %19 = vector.load %arg7[%c0_22, %c0_23] : memref<36x768xbf16, #tpu.memory_space<vmem>>, vector<36x768xbf16>
    %cst = arith.constant dense<0.000000e+00> : vector<8x768xf32>
    %20 = tpu.matmul %18, %19, %cst {dimension_numbers = #tpu.dot_dimension_numbers<[1], [0], [0], [1], [0, 0, 1, 1], [], []>} : vector<8x36xbf16>, vector<36x768xbf16>, vector<8x768xf32> -> vector<8x768xf32>
    %c0_24 = arith.constant 0 : index
    %c0_25 = arith.constant 0 : index
    %21 = vector.load %arg3[%c0_24, %c0_25] : memref<1x768xf32, #tpu.memory_space<vmem>>, vector<1x768xf32>
    %22 = vector.broadcast %21 : vector<1x768xf32> to vector<8x768xf32>
    %23 = arith.mulf %20, %22 : vector<8x768xf32>
    %cst_26 = arith.constant dense<0.000000e+00> : vector<8xf32>
    %24 = vector.multi_reduction <add>, %23, %cst_26 [1] : vector<8x768xf32> to vector<8xf32>
    %25 = vector.shape_cast %24 : vector<8xf32> to vector<8x1xf32>
    %cst_27 = arith.constant 0.001953125 : f32
    %26 = vector.broadcast %cst_27 : f32 to vector<8x1xf32>
    %27 = arith.mulf %25, %26 : vector<8x1xf32>
    %28 = arith.mulf %23, %20 : vector<8x768xf32>
    %cst_28 = arith.constant dense<0.000000e+00> : vector<8xf32>
    %29 = vector.multi_reduction <add>, %28, %cst_28 [1] : vector<8x768xf32> to vector<8xf32>
    %30 = vector.shape_cast %29 : vector<8xf32> to vector<8x1xf32>
    %cst_29 = arith.constant 0.001953125 : f32
    %31 = vector.broadcast %cst_29 : f32 to vector<8x1xf32>
    %32 = arith.mulf %30, %31 : vector<8x1xf32>
    %33 = arith.mulf %27, %27 : vector<8x1xf32>
    %34 = arith.subf %32, %33 : vector<8x1xf32>
    %cst_30 = arith.constant 0.000000e+00 : f32
    %35 = vector.broadcast %cst_30 : f32 to vector<8x1xf32>
    %36 = arith.maximumf %34, %35 : vector<8x1xf32>
    %cst_31 = arith.constant 9.99999974E-6 : f32
    %37 = vector.broadcast %cst_31 : f32 to vector<8x1xf32>
    %38 = arith.addf %36, %37 : vector<8x1xf32>
    %39 = math.rsqrt %38 : vector<8x1xf32>
    %c0_32 = arith.constant 0 : index
    %c0_33 = arith.constant 0 : index
    %40 = vector.load %arg4[%c0_32, %c0_33] : memref<8x1xf32, #tpu.memory_space<vmem>>, vector<8x1xf32>
    %41 = arith.mulf %40, %39 : vector<8x1xf32>
    %c0_34 = arith.constant 0 : index
    %c0_35 = arith.constant 0 : index
    %42 = vector.load %arg5[%c0_34, %c0_35] : memref<8x1xf32, #tpu.memory_space<vmem>>, vector<8x1xf32>
    %43 = arith.mulf %27, %41 : vector<8x1xf32>
    %44 = arith.subf %42, %43 : vector<8x1xf32>
    %45 = vector.broadcast %41 : vector<8x1xf32> to vector<8x768xf32>
    %46 = arith.mulf %20, %45 : vector<8x768xf32>
    %47 = vector.broadcast %44 : vector<8x1xf32> to vector<8x768xf32>
    %48 = arith.addf %46, %47 : vector<8x768xf32>
    %cst_36 = arith.constant 0.000000e+00 : f32
    %49 = vector.broadcast %cst_36 : f32 to vector<8x768xf32>
    %50 = arith.maximumf %48, %49 : vector<8x768xf32>
    %c0_37 = arith.constant 0 : index
    %c0_38 = arith.constant 0 : index
    %51 = vector.load %arg6[%c0_37, %c0_38] : memref<8x768xf32, #tpu.memory_space<vmem>>, vector<8x768xf32>
    tpu.vector_store %arg6[%c0_37, %c0_38], %50 {strides = array<i32>} : memref<8x768xf32, #tpu.memory_space<vmem>>, vector<8x768xf32>,
    return
  }
  func.func @transform_0(%arg0: i32) -> (i32, i32) {
    %c0_i32 = arith.constant 0 : i32
    %c0_i32_0 = arith.constant 0 : i32
    %c0_i32_1 = arith.constant 0 : i32
    return %c0_i32, %c0_i32_0 : i32, i32
  }
  func.func @transform_1(%arg0: i32) -> (i32, i32) {
    %c0_i32 = arith.constant 0 : i32
    %c0_i32_0 = arith.constant 0 : i32
    %c0_i32_1 = arith.constant 0 : i32
    return %c0_i32, %c0_i32_0 : i32, i32
  }
  func.func @transform_2(%arg0: i32) -> (i32, i32) {
    %c0_i32 = arith.constant 0 : i32
    %c0_i32_0 = arith.constant 0 : i32
    %c0_i32_1 = arith.constant 0 : i32
    return %c0_i32, %c0_i32_0 : i32, i32
  }
  func.func @transform_3(%arg0: i32) -> (i32, i32) {
    %c0_i32 = arith.constant 0 : i32
    %c0_i32_0 = arith.constant 0 : i32
    %c0_i32_1 = arith.constant 0 : i32
    return %c0_i32, %c0_i32_0 : i32, i32
  }
  func.func @transform_4(%arg0: i32) -> (i32, i32) {
    %c0_i32 = arith.constant 0 : i32
    %c0_i32_0 = arith.constant 0 : i32
    %c0_i32_1 = arith.constant 0 : i32
    return %c0_i32, %c0_i32_0 : i32, i32
  }
  func.func @transform_5(%arg0: i32) -> (i32, i32) {
    %c0_i32 = arith.constant 0 : i32
    %c0_i32_0 = arith.constant 0 : i32
    %c0_i32_1 = arith.constant 0 : i32
    return %c0_i32, %c0_i32_0 : i32, i32
  }
}

</mosaic_0001>

<bundles_post_ra>
// kernel: sep_conv_br.1
= control target key start
LH: loop header
LB: loop body
LE: loop exit
PB: predicated region body
PF: predicated region fallthrough
CT: control target
= control target key end

     0   :  { %v61_v0 = vlaneseq  ;;  %v946_v1 = vmov 1983009808   ;;  %s947_s20 = smov 126   ;;  %s948_s21 = smov 127   ;;  %v955_v33 = vmov 0   ;;  %vm99_vm0 = vcmask 1043456   ;;  %s1228_s0 = inlined_call_operand.vmem [shape: bf16[4,806], index: 0, kind: input, shape index: {}]   ;;  %s1229_s1 = inlined_call_operand.vmem [shape: bf16[8,36], index: 1, kind: input, shape index: {}]   ;;  %s1230_s2 = inlined_call_operand.vmem [shape: f32[1,768], index: 2, kind: input, shape index: {}]   ;;  %s1231_s3 = inlined_call_operand.vmem [shape: f32[8,1], index: 3, kind: input, shape index: {}]   ;;  %s1232_s4 = inlined_call_operand.vmem [shape: f32[8,1], index: 4, kind: input, shape index: {}]   ;;  %s1233_s5 = inlined_call_operand.vmem [shape: f32[8,768], index: 5, kind: output, shape index: {}]  }
   0x1   :  { %v59_v2 = vunpack.c.l.s4 %v946_v1  ;;  %v113_v3 = vld [vmem:[%s1228_s0] sm:$0xff]  ;;  %s949_s22 = smov 110   ;;  %s950_s23 = smov 109   ;;  %v54_v12 = vld [vmem:[%s1228_s0 + $0x8] sm:$0x3f]  ;;  %672 = vmatprep.mubr.bf16.mxu0 %v955_v33  ;;  %713 = vmatprep.mubr.bf16.mxu1 %v955_v33  ;;  %vm160_vm1 = vcmask 1031168  }
   0x2   :  { %v989_v4 = vshrl.u32 %v61_v0, 7  ;;  %v117_v5 = vcombine.high %v113_v3, %v113_v3  ;;  %872 = vst.sshfl [vmem:[#allocation2] sm:$0xf pattern:$0x76325410] %v113_v3  ;;  %v57_v7 = vcombine.low %v113_v3, %v113_v3  ;;  %s951_s24 = smov 108   ;;  %v72_v13 = vcombine.low %v54_v12, %v54_v12  ;;  %908 = vset.pattern.permute.xlu0 %v955_v33 }
   0x3   :  { %v60_v6 = vunpack.c.0.s8 %v59_v2  ;;  %s952_s27 = smov 92   ;;  %v114_v14 = vld [vmem:[%s1228_s0 + $0x8] sm:$0x3f]  ;;  %s953_s7 = smov 91   ;;  %909 = vset.pattern.permute.xlu1 %v955_v33  ;;  %vm101_vm2 = vcmask 1039360   ;;  %vm219_vm3 = vcmask 900096  }
   0x4   :  { %873 = vst.sshfl [vmem:[#allocation2 + $0x8] sm:$0xf pattern:$0x76325410] %v117_v5  ;;  %v173_v15 = vld [vmem:[%s1228_s0 + $0x8] sm:$0x3f]  ;;  %v132_v22 = vcombine.high %v114_v14, %v114_v14 }
   0x5   :  { %v992_v8 = vsub.s32 %v60_v6, %v989_v4  ;;  %v191_v18 = vcombine.low %v173_v15, %v173_v15  ;;  %v871_v19 = vld.sshfl [vmem:[%s1228_s0 + $0x8] sm:$0x33 pattern:$0x76325410]  ;;  %s954_s10 = smov 90   ;;  %vm278_vm4 = vcmask 891904  }
   0x6   :  { %52 = vst [vmem:[#allocation2 + $0x10] sm:$0x33] %v871_v19  ;;  %v291_v23 = vld [vmem:[%s1228_s0 + $0x8] sm:$0x3f]  ;;  %vm337_vm5 = vcmask 883712   ;;  %vm396_vm6 = vcmask 752640  }
   0x7   :  { %v124_v9 = vrot.slane %v113_v3, %v992_v8  ;;  %v64_v10 = vrot.slane %v57_v7, %v992_v8  ;;  %v131_v11 = vrot.slane %v117_v5, %v992_v8  ;;  %v139_v16 = vrot.slane %v114_v14, %v992_v8  ;;  %v232_v27 = vld [vmem:[%s1228_s0 + $0x8] sm:$0x3f] }
   0x8   :  { %v79_v17 = vrot.slane %v72_v13, %v992_v8  ;;  %v198_v20 = vrot.slane %v191_v18, %v992_v8  ;;  %v86_v21 = vrot.slane %v54_v12, %v992_v8  ;;  %v205_v24 = vrot.slane %v173_v15, %v992_v8  ;;  %v409_v28 = vld [vmem:[%s1228_s0 + $0x8] sm:$0x3f] }
   0x9   :  { %147 = vrot.lane.b32.xlu1 %v124_v9, %s947_s20  ;;  %87 = vrot.lane.b32.xlu0 %v64_v10, %s948_s21  ;;  %v146_v25 = vrot.slane %v132_v22, %v992_v8  ;;  %v309_v26 = vcombine.low %v291_v23, %v291_v23  ;;  %v257_v30 = vrot.slane %v232_v27, %v992_v8  ;;  %v350_v32 = vld [vmem:[%s1228_s0 + $0x8] sm:$0x3f]  ;;  %vm455_vm7 = vcmask 744448  }
   0xa   :  { %v427_v31 = vcombine.low %v409_v28, %v409_v28  ;;  %v375_v35 = vrot.slane %v350_v32, %v992_v8  ;;  %v250_v36 = vcombine.high %v232_v27, %v232_v27  ;;  %v323_v37 = vrot.slane %v291_v23, %v992_v8  ;;  %v468_v40 = vld [vmem:[%s1228_s0 + $0x8] sm:$0x3f] }
   0xb   :  { %v316_v29 = vrot.slane %v309_v26, %v992_v8  ;;  %v368_v39 = vcombine.high %v350_v32, %v350_v32  ;;  %v441_v41 = vrot.slane %v409_v28, %v992_v8  ;;  %v486_v43 = vcombine.high %v468_v40, %v468_v40 }
   0xc   :  { %v434_v34 = vrot.slane %v427_v31, %v992_v8  ;;  %v264_v38 = vrot.slane %v250_v36, %v992_v8  ;;  %v493_v45 = vrot.slane %v468_v40, %v992_v8  ;;  %vm514_vm8 = vcmask 736256  }
   0xd   :  { %149 = vrot.lane.b32.xlu1 %v131_v11, %s947_s20  ;;  %89 = vrot.lane.b32.xlu0 %v124_v9, %s948_s21  ;;  %v382_v42 = vrot.slane %v368_v39, %v992_v8  ;;  %v500_v44 = vrot.slane %v486_v43, %v992_v8  ;;  %vm621_vm9 = vcmask 1041408   ;;  %vm617_vm10 = vcmask 293888  }
  0x11   :  { %208 = vrot.lane.b32.xlu1 %v124_v9, %s949_s22  ;;  %206 = vrot.lane.b32.xlu0 %v64_v10, %s949_s22 }
  0x15   :  { %267 = vrot.lane.b32.xlu1 %v131_v11, %s950_s23  ;;  %265 = vrot.lane.b32.xlu0 %v124_v9, %s950_s23 }
  0x19   :  { %326 = vrot.lane.b32.xlu1 %v124_v9, %s951_s24  ;;  %324 = vrot.lane.b32.xlu0 %v64_v10, %s951_s24 }
  0x1d   :  { %385 = vrot.lane.b32.xlu1 %v131_v11, %s952_s27  ;;  %383 = vrot.lane.b32.xlu0 %v124_v9, %s952_s27 }
  0x21   :  { %444 = vrot.lane.b32.xlu1 %v124_v9, %s953_s7  ;;  %442 = vrot.lane.b32.xlu0 %v64_v10, %s953_s7 }
  0x25   :  { %151 = vrot.lane.b32.xlu1 %v139_v16, %s947_s20  ;;  %91 = vrot.lane.b32.xlu0 %v79_v17, %s948_s21 }
  0x29   :  { %501 = vrot.lane.b32.xlu1 %v124_v9, %s954_s10  ;;  %210 = vrot.lane.b32.xlu0 %v198_v20, %s949_s22 }
  0x2d   :  { %93 = vrot.lane.b32.xlu1 %v86_v21, %s948_s21  ;;  %503 = vrot.lane.b32.xlu0 %v131_v11, %s954_s10 }
  0x31   :  { %212 = vrot.lane.b32.xlu1 %v205_v24, %s949_s22  ;;  %153 = vrot.lane.b32.xlu0 %v146_v25, %s947_s20 }
  0x35   :  { %328 = vrot.lane.b32.xlu1 %v316_v29, %s951_s24  ;;  %269 = vrot.lane.b32.xlu0 %v257_v30, %s950_s23 }
  0x39   :  { %446 = vrot.lane.b32.xlu1 %v434_v34, %s953_s7  ;;  %387 = vrot.lane.b32.xlu0 %v375_v35, %s952_s27 }
  0x3d   :  { %330 = vrot.lane.b32.xlu1 %v323_v37, %s951_s24  ;;  %271 = vrot.lane.b32.xlu0 %v264_v38, %s950_s23 }
  0x41   :  { %448 = vrot.lane.b32.xlu1 %v441_v41, %s953_s7  ;;  %389 = vrot.lane.b32.xlu0 %v382_v42, %s952_s27 }
  0x45   :  { %507 = vrot.lane.b32.xlu1 %v500_v44, %s954_s10  ;;  %505 = vrot.lane.b32.xlu0 %v493_v45, %s954_s10 }
  0x7b   :  { %v148_v46 = vpop.permute.xlu1 %147  ;;  %v88_v47 = vpop.permute.xlu0 %87 }
  0x7c   :  { %v155_v48 = vrot.slane %v148_v46, 4  ;;  %v95_v51 = vrot.slane %v88_v47, 4 }
  0x7f   :  { %v1076_v49 = vpop.permute.xlu1 %149  ;;  %v1078_v50 = vpop.permute.xlu0 %89 }
  0x80   :  { %v156_v52 = vrot.slane %v1076_v49, 4  ;;  %v96_v53 = vrot.slane %v1078_v50, 4 }
  0x82   :  { %v159_v54 = vsel %vm99_vm0, %v155_v48, %v156_v52  ;;  %v100_v55 = vsel %vm99_vm0, %v95_v51, %v96_v53 }
  0x83   :  { %v161_v56 = vsel %vm160_vm1, %v148_v46, %v159_v54  ;;  %v102_v57 = vsel %vm101_vm2, %v88_v47, %v100_v55  ;;  %v209_v58 = vpop.permute.xlu1 %208  ;;  %v207_v59 = vpop.permute.xlu0 %206 }
  0x84   :  { %169 = vst [vmem:[#allocation2 + $0x18] sm:$0x33] %v161_v56  ;;  %110 = vst [vmem:[#allocation2] sm:$0xcc] %v102_v57  ;;  %v215_v60 = vrot.slane %v209_v58, 4  ;;  %v214_v61 = vrot.slane %v207_v59, 4 }
  0x86   :  { %v218_v62 = vsel %vm99_vm0, %v214_v61, %v215_v60 }
  0x87   :  { %v220_v63 = vsel %vm219_vm3, %v207_v59, %v218_v62  ;;  %v1088_v0 = vpop.permute.xlu1 %267  ;;  %v266_v1 = vpop.permute.xlu0 %265 }
  0x88   :  { %228 = vst [vmem:[#allocation2 + $0x18] sm:$0xcc] %v220_v63  ;;  %v274_v2 = vrot.slane %v1088_v0, 4  ;;  %v273_v3 = vrot.slane %v266_v1, 4 }
  0x8a   :  { %v277_v5 = vsel %vm99_vm0, %v273_v3, %v274_v2 }
  0x8b   :  { %v279_v6 = vsel %vm278_vm4, %v266_v1, %v277_v5  ;;  %v1095_v7 = vpop.permute.xlu1 %326  ;;  %v325_v8 = vpop.permute.xlu0 %324 }
  0x8c   :  { %287 = vst [vmem:[#allocation2 + $0x30] sm:$0x33] %v279_v6  ;;  %v333_v9 = vrot.slane %v1095_v7, 4  ;;  %v332_v10 = vrot.slane %v325_v8, 4 }
  0x8e   :  { %v336_v11 = vsel %vm99_vm0, %v332_v10, %v333_v9 }
  0x8f   :  { %v338_v12 = vsel %vm337_vm5, %v325_v8, %v336_v11  ;;  %v1102_v13 = vpop.permute.xlu1 %385  ;;  %v384_v14 = vpop.permute.xlu0 %383  ;;  %v920_v15 = vld [vmem:[#allocation2 + $0x4] ss:$24 sps:$4 sm:$0xff]   ;;  %v922_v16 = vld [vmem:[#allocation2] ss:$24 sps:$4 sm:$0xff]  }
  0x90   :  { %346 = vst [vmem:[#allocation2 + $0x30] sm:$0xcc] %v338_v12  ;;  %v392_v17 = vrot.slane %v1102_v13, 4  ;;  %v391_v18 = vrot.slane %v384_v14, 4  ;;  %640 = vmatprep.subr.bf16.mxu0 %v920_v15 }
  0x91   :  { %641 = vmatpush1.bf16.msra.mxu0 %v922_v16 }
  0x92   :  { %v395_v19 = vsel %vm99_vm0, %v391_v18, %v392_v17 }
  0x93   :  { %v397_v20 = vsel %vm396_vm6, %v384_v14, %v395_v19  ;;  %v1109_v21 = vpop.permute.xlu1 %444  ;;  %v443_v22 = vpop.permute.xlu0 %442 }
  0x94   :  { %405 = vst [vmem:[#allocation2 + $0x48] sm:$0x33] %v397_v20  ;;  %v451_v23 = vrot.slane %v1109_v21, 4  ;;  %v450_v24 = vrot.slane %v443_v22, 4 }
  0x96   :  { %v454_v25 = vsel %vm99_vm0, %v450_v24, %v451_v23 }
  0x97   :  { %v456_v26 = vsel %vm455_vm7, %v443_v22, %v454_v25  ;;  %v152_v27 = vpop.permute.xlu1 %151  ;;  %v92_v28 = vpop.permute.xlu0 %91 }
  0x98   :  { %464 = vst [vmem:[#allocation2 + $0x48] sm:$0xcc] %v456_v26  ;;  %v157_v29 = vrot.slane %v152_v27, 4  ;;  %v97_v30 = vrot.slane %v92_v28, 4 }
  0x9a   :  { %v162_v31 = vsel %vm99_vm0, %v156_v52, %v157_v29  ;;  %v103_v32 = vsel %vm99_vm0, %v96_v53, %v97_v30 }
  0x9b   :  { %v163_v34 = vsel %vm160_vm1, %v1076_v49, %v162_v31  ;;  %v104_v35 = vsel %vm101_vm2, %v1078_v50, %v103_v32  ;;  %v502_v36 = vpop.permute.xlu1 %501  ;;  %v211_v37 = vpop.permute.xlu0 %210 }
  0x9c   :  { %170 = vst [vmem:[#allocation2 + $0x20] sm:$0x33] %v163_v34  ;;  %111 = vst [vmem:[#allocation2 + $0x8] sm:$0xcc] %v104_v35  ;;  %v216_v38 = vrot.slane %v211_v37, 4  ;;  %v509_v39 = vrot.slane %v502_v36, 4 }
  0x9e   :  { %v221_v40 = vsel %vm99_vm0, %v215_v60, %v216_v38 }
  0x9f   :  { %v222_v41 = vsel %vm219_vm3, %v209_v58, %v221_v40  ;;  %v94_v42 = vpop.permute.xlu1 %93  ;;  %v1124_v43 = vpop.permute.xlu0 %503  ;;  %v923_v44 = vld [vmem:[#allocation2 + $0x34] ss:$24 sps:$4 sm:$0xff]   ;;  %v925_v45 = vld [vmem:[#allocation2 + $0x30] ss:$24 sps:$4 sm:$0xff]  }
  0xa0   :  { %229 = vst [vmem:[#allocation2 + $0x20] sm:$0xcc] %v222_v41  ;;  %v98_v46 = vrot.slane %v94_v42, 4  ;;  %v510_v47 = vrot.slane %v1124_v43, 4  ;;  %642 = vmatprep.subr.bf16.mxu0 %v923_v44 }
  0xa1   :  { %643 = vmatpush1.bf16.msra.mxu0 %v925_v45 }
  0xa2   :  { %v105_v48 = vsel %vm99_vm0, %v97_v30, %v98_v46  ;;  %v513_v49 = vsel %vm99_vm0, %v509_v39, %v510_v47 }
  0xa3   :  { %v106_v50 = vsel %vm101_vm2, %v92_v28, %v105_v48  ;;  %v515_v51 = vsel %vm514_vm8, %v502_v36, %v513_v49  ;;  %v213_v52 = vpop.permute.xlu1 %212  ;;  %v154_v53 = vpop.permute.xlu0 %153 }
  0xa4   :  { %112 = vst [vmem:[#allocation2 + $0x10] sm:$0xcc] %v106_v50  ;;  %523 = vst [vmem:[#allocation2 + $0x60] sm:$0x33] %v515_v51  ;;  %v217_v54 = vrot.slane %v213_v52, 4  ;;  %v158_v55 = vrot.slane %v154_v53, 4 }
  0xa6   :  { %v223_v56 = vsel %vm99_vm0, %v216_v38, %v217_v54  ;;  %v164_v57 = vsel %vm99_vm0, %v157_v29, %v158_v55 }
  0xa7   :  { %v224_v58 = vsel %vm219_vm3, %v211_v37, %v223_v56  ;;  %v165_v59 = vsel %vm160_vm1, %v152_v27, %v164_v57  ;;  %v329_v60 = vpop.permute.xlu1 %328  ;;  %v270_v61 = vpop.permute.xlu0 %269  ;;  %v926_v62 = vld [vmem:[#allocation2 + $0xc] ss:$24 sps:$4 sm:$0xff]   ;;  %v928_v63 = vld [vmem:[#allocation2 + $0x8] ss:$24 sps:$4 sm:$0xff]  }
  0xa8   :  { %230 = vst [vmem:[#allocation2 + $0x28] sm:$0xcc] %v224_v58  ;;  %171 = vst [vmem:[#allocation2 + $0x28] sm:$0x33] %v165_v59  ;;  %v334_v1 = vrot.slane %v329_v60, 4  ;;  %v275_v3 = vrot.slane %v270_v61, 4  ;;  %681 = vmatprep.subr.bf16.mxu1 %v926_v62 }
  0xa9   :  { %682 = vmatpush1.bf16.msra.mxu1 %v928_v63  ;;  %v767_v58 = vsub.s32 0, %v989_v4  ;;  %v763_v59 = vld [vmem:[%s1230_s2] sm:$0x3f] }
  0xaa   :  { %v339_v5 = vsel %vm99_vm0, %v333_v9, %v334_v1  ;;  %v280_v6 = vsel %vm99_vm0, %v274_v2, %v275_v3 }
  0xab   :  { %v340_v8 = vsel %vm337_vm5, %v1095_v7, %v339_v5  ;;  %v281_v10 = vsel %vm278_vm4, %v1088_v0, %v280_v6  ;;  %v447_v11 = vpop.permute.xlu1 %446  ;;  %v388_v12 = vpop.permute.xlu0 %387  ;;  %v539_v14 = vld [vmem:[#allocation2 + $0x60] sm:$0x33] }
  0xac   :  { %347 = vst [vmem:[#allocation2 + $0x38] sm:$0xcc] %v340_v8  ;;  %288 = vst [vmem:[#allocation2 + $0x38] sm:$0x33] %v281_v10  ;;  %v452_v15 = vrot.slane %v447_v11, 4  ;;  %v393_v16 = vrot.slane %v388_v12, 4  ;;  %v887_v9 = vcombine.high %v539_v14, %v539_v14  ;;  %v886_v18 = vcombine.low %v539_v14, %v539_v14 }
  0xae   :  { %v457_v2 = vsel %vm99_vm0, %v451_v23, %v452_v15  ;;  %v398_v7 = vsel %vm99_vm0, %v392_v17, %v393_v16  ;;  %892 = vmatprep.subr.msk.bf16.mxu0 %vm621_vm9, %v887_v9  ;;  %v623_v0 = vsel %vm621_vm9, %v886_v18, 0  ;;  %v526_v23 = vld [vmem:[%s1229_s1] sm:$0xf]  ;;  %v783_v9 = vsub.s32 4, %v989_v4 }
  0xaf   :  { %v458_v19 = vsel %vm455_vm7, %v1109_v21, %v457_v2  ;;  %v399_v20 = vsel %vm396_vm6, %v1102_v13, %v398_v7  ;;  %v331_v22 = vpop.permute.xlu1 %330  ;;  %v272_v24 = vpop.permute.xlu0 %271  ;;  %645 = vmatpush1.bf16.msra.mxu0 %v623_v0  ;;  %v933_v25 = vld [vmem:[#allocation2 + $0x14] ss:$24 sps:$4 sm:$0xff]   ;;  %v931_v27 = vld [vmem:[#allocation2 + $0x10] ss:$24 sps:$4 sm:$0xff]   ;;  %v787_v2 = vsub.s32 5, %v989_v4 }
  0xb0   :  { %465 = vst [vmem:[#allocation2 + $0x50] sm:$0xcc] %v458_v19  ;;  %406 = vst [vmem:[#allocation2 + $0x50] sm:$0x33] %v399_v20  ;;  %v335_v17 = vrot.slane %v331_v22, 4  ;;  %v276_v26 = vrot.slane %v272_v24, 4  ;;  %722 = vmatprep.subr.bf16.mxu0 %v933_v25  ;;  %v784_v0 = vrot.slane %v763_v59, %v783_v9 }
  0xb2   :  { %v341_v21 = vsel %vm99_vm0, %v334_v1, %v335_v17  ;;  %v282_v28 = vsel %vm99_vm0, %v275_v3, %v276_v26  ;;  %893 = vmatmul.mubr.msk.bf16.vlgmr.msra.gmra.mrb[0].mxu0 %vm617_vm10, %v526_v23 }
  0xb3   :  { %v342_v13 = vsel %vm337_vm5, %v329_v60, %v341_v21  ;;  %v283_v29 = vsel %vm278_vm4, %v270_v61, %v282_v28  ;;  %v449_v30 = vpop.permute.xlu1 %448  ;;  %v390_v31 = vpop.permute.xlu0 %389  ;;  %723 = vmatpush1.bf16.msra.mxu0 %v931_v27  ;;  %754 = vmatprep.mubr.bf16.mxu0 %v955_v33  ;;  %v771_v60 = vsub.s32 1, %v989_v4  ;;  %v768_v61 = vrot.slane %v763_v59, %v767_v58 }
  0xb4   :  { %348 = vst [vmem:[#allocation2 + $0x40] sm:$0xcc] %v342_v13  ;;  %289 = vst [vmem:[#allocation2 + $0x40] sm:$0x33] %v283_v29  ;;  %v453_v32 = vrot.slane %v449_v30, 4  ;;  %v394_v34 = vrot.slane %v390_v31, 4 }
  0xb5   :  { %v772_v62 = vrot.slane %v763_v59, %v771_v60 }
  0xb6   :  { %v459_v35 = vsel %vm99_vm0, %v452_v15, %v453_v32  ;;  %v400_v36 = vsel %vm99_vm0, %v393_v16, %v394_v34  ;;  %v775_v15 = vsub.s32 2, %v989_v4  ;;  %v779_v16 = vsub.s32 3, %v989_v4 }
  0xb7   :  { %v460_v37 = vsel %vm455_vm7, %v447_v11, %v459_v35  ;;  %v401_v38 = vsel %vm396_vm6, %v388_v12, %v400_v36  ;;  %v508_v39 = vpop.permute.xlu1 %507  ;;  %v506_v40 = vpop.permute.xlu0 %505  ;;  %v934_v41 = vld [vmem:[#allocation2 + $0x3c] ss:$24 sps:$4 sm:$0xff]   ;;  %v936_v42 = vld [vmem:[#allocation2 + $0x38] ss:$24 sps:$4 sm:$0xff]  }
  0xb8   :  { %466 = vst [vmem:[#allocation2 + $0x58] sm:$0xcc] %v460_v37  ;;  %407 = vst [vmem:[#allocation2 + $0x58] sm:$0x33] %v401_v38  ;;  %v512_v44 = vrot.slane %v508_v39, 4  ;;  %v511_v33 = vrot.slane %v506_v40, 4  ;;  %683 = vmatprep.subr.bf16.mxu1 %v934_v41  ;;  %v776_v18 = vrot.slane %v763_v59, %v775_v15  ;;  %v780_v7 = vrot.slane %v763_v59, %v779_v16 }
  0xb9   :  { %684 = vmatpush1.bf16.msra.mxu1 %v936_v42 }
  0xba   :  { %v516_v45 = vsel %vm99_vm0, %v510_v47, %v511_v33  ;;  %v518_v46 = vsel %vm99_vm0, %v511_v33, %v512_v44 }
  0xbb   :  { %v517_v48 = vsel %vm514_vm8, %v1124_v43, %v516_v45  ;;  %v519_v49 = vsel %vm514_vm8, %v506_v40, %v518_v46 }
  0xbc   :  { %524 = vst [vmem:[#allocation2 + $0x68] sm:$0x33] %v517_v48  ;;  %525 = vst [vmem:[#allocation2 + $0x70] sm:$0x33] %v519_v49 }
  0xbf   :  { %v937_v50 = vld [vmem:[#allocation2 + $0x40] ss:$24 sps:$4 sm:$0xff]   ;;  %v939_v51 = vld [vmem:[#allocation2 + $0x44] ss:$24 sps:$4 sm:$0xff]  }
  0xc0   :  { %724 = vmatprep.subr.bf16.mxu0 %v939_v51  ;;  %v828_v51 = vld [vmem:[%s1231_s3] sm:$0xff] }
  0xc1   :  { %725 = vmatpush1.bf16.msra.mxu0 %v937_v50 }
  0xc3   :  { %v540_v52 = vld [vmem:[#allocation2 + $0x68] sm:$0x33]  ;;  %v541_v53 = vld [vmem:[#allocation2 + $0x70] sm:$0x33] }
  0xc4   :  { %v889_v54 = vcombine.high %v540_v52, %v540_v52  ;;  %v891_v55 = vcombine.high %v541_v53, %v541_v53  ;;  %v888_v56 = vcombine.low %v540_v52, %v540_v52  ;;  %v890_v47 = vcombine.low %v541_v53, %v541_v53 }
  0xc6   :  { %894 = vmatprep.subr.msk.bf16.mxu1 %vm621_vm9, %v889_v54  ;;  %896 = vmatprep.subr.msk.bf16.mxu0 %vm621_vm9, %v891_v55  ;;  %v629_v43 = vsel %vm621_vm9, %v888_v56, 0  ;;  %v635_v57 = vsel %vm621_vm9, %v890_v47, 0  ;;  %v830_v54 = vld [vmem:[%s1232_s4] sm:$0xff] }
  0xc7   :  { %686 = vmatpush1.bf16.msra.mxu1 %v629_v43  ;;  %727 = vmatpush1.bf16.msra.mxu0 %v635_v57 }
  0xca   :  { %895 = vmatmul.mubr.msk.bf16.vlgmr.msra.gmra.mrb[0].mxu1 %vm617_vm10, %v526_v23  ;;  %897 = vmatmul.mubr.msk.bf16.vlgmr.msra.gmra.mrb[4].mxu0 %vm617_vm10, %v526_v23  ;;  %v788_v23 = vrot.slane %v763_v59, %v787_v2 }
 0x185   :  { %v1190_v63 = vpop.f32.mrb[0].mxu0 }
 0x186   :  { %v795_v1 = vmul.f32 %v768_v61, %v1190_v63  ;;  %v1193_v3 = vpop.f32.mrb[1].mxu0 }
 0x187   :  { %v796_v5 = vmul.f32 %v772_v62, %v1193_v3  ;;  %v678_v6 = vpop.f32.mrb[2].mxu0 }
 0x188   :  { %v809_v8 = vmul.f32 %v795_v1, %v1190_v63  ;;  %v679_v10 = vpop.f32.mrb[3].mxu0 }
 0x189   :  { %v801_v11 = vadd.f32 %v796_v5, %v795_v1  ;;  %v810_v12 = vmul.f32 %v796_v5, %v1193_v3 }
 0x18b   :  { %v815_v14 = vadd.f32 %v810_v12, %v809_v8 }
 0x19d   :  { %v715_v19 = vpop.f32.mrb[0].mxu1  ;;  %v756_v20 = vpop.f32.mrb[4].mxu0 }
 0x19e   :  { %v797_v22 = vmul.f32 %v776_v18, %v715_v19  ;;  %v717_v24 = vpop.f32.mrb[1].mxu1  ;;  %v758_v25 = vpop.f32.mrb[5].mxu0  ;;  %v799_v13 = vmul.f32 %v784_v0, %v756_v20 }
 0x19f   :  { %v798_v17 = vmul.f32 %v780_v7, %v717_v24  ;;  %v719_v26 = vpop.f32.mrb[2].mxu1  ;;  %v760_v27 = vpop.f32.mrb[6].mxu0  ;;  %v800_v34 = vmul.f32 %v788_v23, %v758_v25 }
 0x1a0   :  { %v802_v21 = vadd.f32 %v801_v11, %v797_v22  ;;  %v811_v28 = vmul.f32 %v797_v22, %v715_v19  ;;  %v720_v29 = vpop.f32.mrb[3].mxu1  ;;  %v761_v30 = vpop.f32.mrb[7].mxu0  ;;  %v813_v35 = vmul.f32 %v799_v13, %v756_v20 }
 0x1a1   :  { %v812_v31 = vmul.f32 %v798_v17, %v717_v24  ;;  %v814_v39 = vmul.f32 %v800_v34, %v758_v25 }
 0x1a2   :  { %v816_v32 = vadd.f32 %v815_v14, %v811_v28  ;;  %v803_v4 = vadd.f32 %v802_v21, %v798_v17 }
 0x1a4   :  { %v804_v36 = vadd.f32 %v803_v4, %v799_v13  ;;  %v817_v37 = vadd.f32 %v816_v32, %v812_v31 }
 0x1a6   :  { %v805_v38 = vadd.f32 %v804_v36, %v800_v34  ;;  %v818_v40 = vadd.f32 %v817_v37, %v813_v35 }
 0x1a8   :  { %806 = vadd.xlane.f32.xlu0 %v805_v38  ;;  %v819_v41 = vadd.f32 %v818_v40, %v814_v39 }
 0x1aa   :  { %820 = vadd.xlane.f32.xlu1 %v819_v41 }
 0x235   :  { %v807_v42 = vpop.xlane.xlu0 %806 }
 0x236   :  { %v808_v44 = vmul.f32 0.001953125, %v807_v42 }
 0x237   :  { %v821_v33 = vpop.xlane.xlu1 %820 }
 0x238   :  { %v823_v45 = vmul.f32 %v808_v44, %v808_v44  ;;  %v822_v46 = vmul.f32 0.001953125, %v821_v33 }
 0x23a   :  { %v824_v48 = vsub.f32 %v822_v46, %v823_v45 }
 0x23c   :  { %v825_v49 = vmax.f32 %v824_v48, 0.0 }
 0x23e   :  { %v826_v50 = vadd.f32 1e-05, %v825_v49 }
 0x240   :  { %944 = vrsqrt.f32 %v826_v50 }
 0x24a   :  { %v945_v52 = vpop.eup %944 }
 0x24b   :  { %v829_v53 = vmul.f32 %v945_v52, %v828_v51 }
 0x24d   :  { %835 = vperm.xlu0 %908, %v829_v53   ;;  %v831_v55 = vmul.f32 %v829_v53, %v808_v44 }
 0x24f   :  { %v832_v56 = vsub.f32 %v830_v54, %v831_v55 }
 0x251   :  { %846 = vperm.xlu1 %909, %v832_v56  }
 0x2cc   :  { %v836_v47 = vpop.permute.xlu0 %835 }
 0x2cd   :  { %v838_v43 = vmul.f32 %v836_v47, %v1190_v63  ;;  %v839_v57 = vmul.f32 %v836_v47, %v1193_v3  ;;  %v840_v58 = vmul.f32 %v836_v47, %v715_v19  ;;  %v841_v59 = vmul.f32 %v836_v47, %v717_v24 }
 0x2ce   :  { %v842_v60 = vmul.f32 %v836_v47, %v756_v20  ;;  %v843_v61 = vmul.f32 %v836_v47, %v758_v25 }
 0x2d0   :  { %v847_v62 = vpop.permute.xlu1 %846 }
 0x2d1   :  { %v849_v1 = vadd.f32 %v847_v62, %v838_v43  ;;  %v850_v5 = vadd.f32 %v847_v62, %v839_v57  ;;  %v851_v6 = vadd.f32 %v847_v62, %v840_v58  ;;  %v852_v8 = vadd.f32 %v847_v62, %v841_v59 }
 0x2d2   :  { %v853_v10 = vadd.f32 %v847_v62, %v842_v60  ;;  %v854_v11 = vadd.f32 %v847_v62, %v843_v61 }
 0x2d3   :  { %v855_v12 = vmax.f32 %v849_v1, 0.0  ;;  %v856_v14 = vmax.f32 %v850_v5, 0.0  ;;  %v857_v15 = vmax.f32 %v851_v6, 0.0  ;;  %v858_v16 = vmax.f32 %v852_v8, 0.0 }
 0x2d4   :  { %v859_v9 = vmax.f32 %v853_v10, 0.0  ;;  %v860_v18 = vmax.f32 %v854_v11, 0.0 }
 0x2d5   :  { %861 = vst [vmem:[%s1233_s5] sm:$0xff] %v855_v12  ;;  %862 = vst [vmem:[%s1233_s5 + $0x8] sm:$0xff] %v856_v14 }
 0x2d6   :  { %863 = vst [vmem:[%s1233_s5 + $0x10] sm:$0xff] %v857_v15  ;;  %864 = vst [vmem:[%s1233_s5 + $0x18] sm:$0xff] %v858_v16 }
 0x2d7   :  { %865 = vst [vmem:[%s1233_s5 + $0x20] sm:$0xff] %v859_v9  ;;  %866 = vst [vmem:[%s1233_s5 + $0x28] sm:$0xff] %v860_v18 }

</bundles_post_ra>
